<compile_context>
chip_gen: v7x
topology: tpu7x:2x2x1
jax: 0.10.0
libtpu: 0.0.40
codegen_flags: <defaults>
</compile_context>

<pallas_src>
import functools
import math

import jax
import jax.numpy as jnp
from jax.experimental import pallas as pl
from jax.experimental.pallas import tpu as pltpu


# ---------------------------------------------------------------------------
# Kernel helpers (traced inside the Pallas kernel body).
# ---------------------------------------------------------------------------
def _layernorm(y, gamma, beta, eps=1e-5):
    # torch.nn.LayerNorm: biased variance over the last dim, then affine.
    mu = jnp.mean(y, axis=-1, keepdims=True)
    var = jnp.mean((y - mu) ** 2, axis=-1, keepdims=True)
    return (y - mu) * jax.lax.rsqrt(var + eps) * gamma + beta


# ---------------------------------------------------------------------------
# Fused decoder-layer kernel — one invocation processes the whole batch.
# Activations are (B*S, D); attention reshapes to (B, S, .) for the batched
# score / weighted-sum contractions (S = 8 keeps these reshapes tile-aligned).
# ---------------------------------------------------------------------------
def decoder_layer_kernel(x_ref, enc_ref,
                         wqkv1_ref, wo1_ref,
                         wq2_ref, wkv2_ref, wo2_ref,
                         w2_ref, w1_ref, vec_ref,
                         out_ref, *, B, S, D, A):
    f32 = jnp.float32
    bf16 = jnp.bfloat16
    scale = 1.0 / math.sqrt(A)

    x = x_ref[...]        # (B*S, D) f32
    enc = enc_ref[...]    # (B*S, D) f32

    # Packed per-feature vectors (f32): rows = [b2, b1, g1, be1, g2, be2, g3, be3]
    b2 = vec_ref[0:1, :]
    b1 = vec_ref[1:2, :]
    g1, be1 = vec_ref[2:3, :], vec_ref[3:4, :]
    g2, be2 = vec_ref[4:5, :], vec_ref[5:6, :]
    g3, be3 = vec_ref[6:7, :], vec_ref[7:8, :]

    def mm(a_f32, w_ref):
        # bf16 operands on the MXU, f32 accumulation.
        return jnp.dot(a_f32.astype(bf16), w_ref[...],
                       preferred_element_type=f32)

    def attention(q2, k2, v2):
        # q2, k2: (B*S, A) f32;  v2: (B*S, D) f32
        q = (q2 * scale).reshape(B, S, A).astype(bf16)   # scale folded into Q
        k = k2.reshape(B, S, A).astype(bf16)
        v = v2.reshape(B, S, D).astype(bf16)
        # QK^T without materializing a transpose of K.
        s = jnp.einsum('bqa,bka->bqk', q, k, preferred_element_type=f32)
        m = jnp.max(s, axis=-1, keepdims=True)
        e = jnp.exp(s - m)
        p = e * pl.reciprocal(jnp.sum(e, axis=-1, keepdims=True), approx=True)
        o = jnp.einsum('bqk,bkd->bqd', p.astype(bf16), v,
                       preferred_element_type=f32)
        return o.reshape(B * S, D)

    # --- self-attention (fused QKV projection) + residual + norm1 ----------
    qkv = mm(x, wqkv1_ref)                                  # (B*S, 2A + D)
    a = attention(qkv[:, :A], qkv[:, A:2 * A], qkv[:, 2 * A:])
    a = mm(a, wo1_ref)                                      # MHA output fc
    x = _layernorm(a + x, g1, be1)

    # --- cross-attention (fused KV projection from enc) + residual + norm2 -
    q = mm(x, wq2_ref)                                      # (B*S, A)
    kv = mm(enc, wkv2_ref)                                  # (B*S, A + D)
    a = attention(q, kv[:, :A], kv[:, A:])
    a = mm(a, wo2_ref)
    x = _layernorm(a + x, g2, be2)

    # --- MLP: fc1(elu(fc2(x))) + residual + norm3 ---------------------------
    h = mm(x, w2_ref) + b2
    # ELU(alpha=1). exp(min(h,0))-1 avoids exp() on large positives; f32 error
    # vs expm1 is <~1e-7 here (expm1 lowering in Mosaic is not guaranteed).
    h = jnp.where(h > 0, h, jnp.exp(jnp.minimum(h, 0.0)) - 1.0)
    a = mm(h, w1_ref) + b1
    x = _layernorm(x + a, g3, be3)

    out_ref[...] = x


# ---------------------------------------------------------------------------
# Wrapper: host-side weight packing + single-step pallas_call.
# ---------------------------------------------------------------------------
def decoder_layer(x, enc, params):
    """x, enc: (B, S, D) float32. params: flat list (see __main__)."""
    (wq1, wk1, wv1, wo1,
     wq2, wk2, wv2, wo2,
     w1, b1, w2, b2,
     g1, be1, g2, be2, g3, be3) = params
    B, S, D = x.shape
    A = wq1.shape[1]
    bf16 = jnp.bfloat16

    # One-time host-side packing: fused projection weights (bf16 MXU inputs)
    # and all (D,) vectors consolidated into a single (8, D) f32 block.
    wqkv1 = jnp.concatenate([wq1, wk1, wv1], axis=1).astype(bf16)   # (D, 2A+D)
    wkv2 = jnp.concatenate([wk2, wv2], axis=1).astype(bf16)         # (D, A+D)
    vec = jnp.stack([b2, b1, g1, be1, g2, be2, g3, be3]).astype(jnp.float32)

    weights = [wqkv1, wo1.astype(bf16),
               wq2.astype(bf16), wkv2, wo2.astype(bf16),
               w2.astype(bf16), w1.astype(bf16), vec]

    # Fold batch+sequence into one 2-D slab; the whole layer is one grid step.
    x2 = x.reshape(B * S, D)
    enc2 = enc.reshape(B * S, D)

    kernel = functools.partial(decoder_layer_kernel, B=B, S=S, D=D, A=A)

    def full_spec(arr):
        nd = arr.ndim
        return pl.BlockSpec(arr.shape, lambda i: (0,) * nd)

    out2 = pl.pallas_call(
        kernel,
        out_shape=jax.ShapeDtypeStruct((B * S, D), jnp.float32),
        grid=(1,),
        in_specs=[full_spec(x2), full_spec(enc2)] + [full_spec(w) for w in weights],
        out_specs=pl.BlockSpec((B * S, D), lambda i: (0, 0)),
        compiler_params=pltpu.CompilerParams(
            dimension_semantics=("arbitrary",)),
    )(x2, enc2, *weights)
    return out2.reshape(B, S, D)


# ---------------------------------------------------------------------------
# Pure-JAX reference mirroring the PyTorch forward.  `cast` lets us mirror the
# kernel's bf16-at-MXU-inputs numerics for a tight check.
# ---------------------------------------------------------------------------
def decoder_layer_ref(x, enc, params, cast=lambda t: t):
    (wq1, wk1, wv1, wo1, wq2, wk2, wv2, wo2,
     w1, b1, w2, b2, g1, be1, g2, be2, g3, be3) = params

    def mm(a, w):
        return jnp.einsum('...i,io->...o', cast(a), cast(w),
                          preferred_element_type=jnp.float32)

    def attn(xq, kv, wq, wk, wv, wo):
        q, k, v = mm(xq, wq), mm(kv, wk), mm(kv, wv)
        s = jnp.einsum('bqa,bka->bqk', cast(q), cast(k),
                       preferred_element_type=jnp.float32)
        s = s / jnp.sqrt(jnp.float32(q.shape[-1]))
        p = jax.nn.softmax(s, axis=-1)
        o = jnp.einsum('bqk,bkd->bqd', cast(p), cast(v),
                       preferred_element_type=jnp.float32)
        return mm(o, wo)

    def ln(y, g, b, eps=1e-5):
        mu = y.mean(-1, keepdims=True)
        var = ((y - mu) ** 2).mean(-1, keepdims=True)
        return (y - mu) / jnp.sqrt(var + eps) * g + b

    a = attn(x, x, wq1, wk1, wv1, wo1)
    x = ln(a + x, g1, be1)
    a = attn(x, enc, wq2, wk2, wv2, wo2)
    x = ln(a + x, g2, be2)
    h = mm(x, w2) + b2
    h = jnp.where(h > 0, h, jnp.expm1(h))
    a = mm(h, w1) + b1
    return ln(x + a, g3, be3)


# ---------------------------------------------------------------------------
if __name__ == "__main__":
    B, S = 2, 8            # batch, sequence length
    D, A = 32, 16          # dim_val, dim_attn (n_heads = 1)

    key = jax.random.PRNGKey(0)
    ks = jax.random.split(key, 20)

    def w(k, shape, scale=0.1):
        return scale * jax.random.normal(k, shape, dtype=jnp.float32)

    x = jax.random.normal(ks[0], (B, S, D), dtype=jnp.float32)
    enc = jax.random.normal(ks[1], (B, S, D), dtype=jnp.float32)

    params = [
        # attn1: Query / Key / Value projections + MHA output fc (as (in, out))
        w(ks[2], (D, A)), w(ks[3], (D, A)), w(ks[4], (D, D)), w(ks[5], (D, D)),
        # attn2
        w(ks[6], (D, A)), w(ks[7], (D, A)), w(ks[8], (D, D)), w(ks[9], (D, D)),
        # fc1 (weight, bias), fc2 (weight, bias)
        w(ks[10], (D, D)), w(ks[11], (D,)),
        w(ks[12], (D, D)), w(ks[13], (D,)),
        # norm1 / norm2 / norm3 (gamma, beta) — non-trivial to exercise affine
        1.0 + w(ks[14], (D,)), w(ks[15], (D,)),
        1.0 + w(ks[16], (D,)), w(ks[17], (D,)),
        1.0 + w(ks[18], (D,)), w(ks[19], (D,)),
    ]

    out = jax.block_until_ready(decoder_layer(x, enc, params))
    assert out.shape == (B, S, D)

    # Tight check vs a reference mirroring the kernel's bf16 MXU inputs.
    ref_bf16 = decoder_layer_ref(x, enc, params,
                                 cast=lambda t: t.astype(jnp.bfloat16))
    assert jnp.allclose(out, ref_bf16, rtol=2e-2, atol=2e-2), "mismatch (bf16 ref)"

    # Loose check vs the full-f32 reference (only bf16 rounding separates them).
    ref_f32 = decoder_layer_ref(x, enc, params)
    assert jnp.allclose(out, ref_f32, rtol=5e-2, atol=5e-2), "mismatch (f32 ref)"

    print("KERNEL_OK")
</pallas_src>

<mosaic_0001>
module attributes {stable_mosaic.version = 11 : i64} {
  func.func @decoder_layer_kernel(%arg0: i32, %arg1: memref<16x32xf32, #tpu.memory_space<vmem>>, %arg2: memref<16x32xf32, #tpu.memory_space<vmem>>, %arg3: memref<32x64xbf16, #tpu.memory_space<vmem>>, %arg4: memref<32x32xbf16, #tpu.memory_space<vmem>>, %arg5: memref<32x16xbf16, #tpu.memory_space<vmem>>, %arg6: memref<32x48xbf16, #tpu.memory_space<vmem>>, %arg7: memref<32x32xbf16, #tpu.memory_space<vmem>>, %arg8: memref<32x32xbf16, #tpu.memory_space<vmem>>, %arg9: memref<32x32xbf16, #tpu.memory_space<vmem>>, %arg10: memref<8x32xf32, #tpu.memory_space<vmem>>, %arg11: memref<16x32xf32, #tpu.memory_space<vmem>>) attributes {dimension_semantics = [#tpu.dimension_semantics<arbitrary>], iteration_bounds = array<i64: 1>, scalar_prefetch = 0 : i64, scratch_operands = 0 : i64, tpu.core_type = #tpu.core_type<tc>, window_params = [{pipeline_mode = #tpu.pipeline_mode<synchronous>, transform_indices = @transform_0, window_bounds = array<i64: 16, 32>}, {pipeline_mode = #tpu.pipeline_mode<synchronous>, transform_indices = @transform_1, window_bounds = array<i64: 16, 32>}, {pipeline_mode = #tpu.pipeline_mode<synchronous>, transform_indices = @transform_2, window_bounds = array<i64: 32, 64>}, {pipeline_mode = #tpu.pipeline_mode<synchronous>, transform_indices = @transform_3, window_bounds = array<i64: 32, 32>}, {pipeline_mode = #tpu.pipeline_mode<synchronous>, transform_indices = @transform_4, window_bounds = array<i64: 32, 16>}, {pipeline_mode = #tpu.pipeline_mode<synchronous>, transform_indices = @transform_5, window_bounds = array<i64: 32, 48>}, {pipeline_mode = #tpu.pipeline_mode<synchronous>, transform_indices = @transform_6, window_bounds = array<i64: 32, 32>}, {pipeline_mode = #tpu.pipeline_mode<synchronous>, transform_indices = @transform_7, window_bounds = array<i64: 32, 32>}, {pipeline_mode = #tpu.pipeline_mode<synchronous>, transform_indices = @transform_8, window_bounds = array<i64: 32, 32>}, {pipeline_mode = #tpu.pipeline_mode<synchronous>, transform_indices = @transform_9, window_bounds = array<i64: 8, 32>}, {pipeline_mode = #tpu.pipeline_mode<synchronous>, transform_indices = @transform_10, window_bounds = array<i64: 16, 32>}]} {
    %c0 = arith.constant 0 : index
    %c0_0 = arith.constant 0 : index
    %0 = vector.load %arg1[%c0, %c0_0] : memref<16x32xf32, #tpu.memory_space<vmem>>, vector<16x32xf32>
    %c0_1 = arith.constant 0 : index
    %c0_2 = arith.constant 0 : index
    %1 = vector.load %arg2[%c0_1, %c0_2] : memref<16x32xf32, #tpu.memory_space<vmem>>, vector<16x32xf32>
    %c0_3 = arith.constant 0 : index
    %c0_4 = arith.constant 0 : index
    %2 = vector.load %arg10[%c0_3, %c0_4] : memref<8x32xf32, #tpu.memory_space<vmem>>, vector<1x32xf32>
    %c1 = arith.constant 1 : index
    %c0_5 = arith.constant 0 : index
    %3 = vector.load %arg10[%c1, %c0_5] : memref<8x32xf32, #tpu.memory_space<vmem>>, vector<1x32xf32>
    %c2 = arith.constant 2 : index
    %c0_6 = arith.constant 0 : index
    %4 = vector.load %arg10[%c2, %c0_6] : memref<8x32xf32, #tpu.memory_space<vmem>>, vector<1x32xf32>
    %c3 = arith.constant 3 : index
    %c0_7 = arith.constant 0 : index
    %5 = vector.load %arg10[%c3, %c0_7] : memref<8x32xf32, #tpu.memory_space<vmem>>, vector<1x32xf32>
    %c4 = arith.constant 4 : index
    %c0_8 = arith.constant 0 : index
    %6 = vector.load %arg10[%c4, %c0_8] : memref<8x32xf32, #tpu.memory_space<vmem>>, vector<1x32xf32>
    %c5 = arith.constant 5 : index
    %c0_9 = arith.constant 0 : index
    %7 = vector.load %arg10[%c5, %c0_9] : memref<8x32xf32, #tpu.memory_space<vmem>>, vector<1x32xf32>
    %c6 = arith.constant 6 : index
    %c0_10 = arith.constant 0 : index
    %8 = vector.load %arg10[%c6, %c0_10] : memref<8x32xf32, #tpu.memory_space<vmem>>, vector<1x32xf32>
    %c7 = arith.constant 7 : index
    %c0_11 = arith.constant 0 : index
    %9 = vector.load %arg10[%c7, %c0_11] : memref<8x32xf32, #tpu.memory_space<vmem>>, vector<1x32xf32>
    %10 = arith.truncf %0 : vector<16x32xf32> to vector<16x32xbf16>
    %c0_12 = arith.constant 0 : index
    %c0_13 = arith.constant 0 : index
    %11 = vector.load %arg3[%c0_12, %c0_13] : memref<32x64xbf16, #tpu.memory_space<vmem>>, vector<32x64xbf16>
    %cst = arith.constant dense<0.000000e+00> : vector<16x64xf32>
    %12 = tpu.matmul %10, %11, %cst {dimension_numbers = #tpu.dot_dimension_numbers<[1], [0], [0], [1], [0, 0, 1, 1], [], []>} : vector<16x32xbf16>, vector<32x64xbf16>, vector<16x64xf32> -> vector<16x64xf32>
    %13 = vector.extract_strided_slice %12 {offsets = [0, 0], sizes = [16, 16], strides = [1, 1]} : vector<16x64xf32> to vector<16x16xf32>
    %14 = vector.extract_strided_slice %12 {offsets = [0, 16], sizes = [16, 16], strides = [1, 1]} : vector<16x64xf32> to vector<16x16xf32>
    %15 = vector.extract_strided_slice %12 {offsets = [0, 32], sizes = [16, 32], strides = [1, 1]} : vector<16x64xf32> to vector<16x32xf32>
    %cst_14 = arith.constant 2.500000e-01 : f32
    %16 = vector.broadcast %cst_14 : f32 to vector<16x16xf32>
    %17 = arith.mulf %13, %16 : vector<16x16xf32>
    %18 = vector.shape_cast %17 : vector<16x16xf32> to vector<2x8x16xf32>
    %19 = arith.truncf %18 : vector<2x8x16xf32> to vector<2x8x16xbf16>
    %20 = vector.shape_cast %14 : vector<16x16xf32> to vector<2x8x16xf32>
    %21 = arith.truncf %20 : vector<2x8x16xf32> to vector<2x8x16xbf16>
    %22 = vector.shape_cast %15 : vector<16x32xf32> to vector<2x8x32xf32>
    %23 = arith.truncf %22 : vector<2x8x32xf32> to vector<2x8x32xbf16>
    "tpu.trace_start"() <{level = 10 : i32, message = "bqa,bka->bqk"}> : () -> ()
    %cst_15 = arith.constant dense<0.000000e+00> : vector<2x8x8xf32>
    %24 = tpu.matmul %19, %21, %cst_15 {dimension_numbers = #tpu.dot_dimension_numbers<[2], [2], [1], [1], [0, 0, 0, 1, 1, 1], [0], [0]>} : vector<2x8x16xbf16>, vector<2x8x16xbf16>, vector<2x8x8xf32> -> vector<2x8x8xf32>
    "tpu.trace_stop"() : () -> ()
    %cst_16 = arith.constant dense<0xFF800000> : vector<2x8xf32>
    %25 = vector.multi_reduction <maximumf>, %24, %cst_16 [2] : vector<2x8x8xf32> to vector<2x8xf32>
    %26 = vector.shape_cast %25 : vector<2x8xf32> to vector<2x8x1xf32>
    %27 = vector.broadcast %26 : vector<2x8x1xf32> to vector<2x8x8xf32>
    %28 = arith.subf %24, %27 : vector<2x8x8xf32>
    %29 = math.exp %28 : vector<2x8x8xf32>
    %cst_17 = arith.constant dense<0.000000e+00> : vector<2x8xf32>
    %30 = vector.multi_reduction <add>, %29, %cst_17 [2] : vector<2x8x8xf32> to vector<2x8xf32>
    %31 = vector.shape_cast %30 : vector<2x8xf32> to vector<2x8x1xf32>
    %32 = tpu.reciprocal %31 {approx = true} : vector<2x8x1xf32> -> vector<2x8x1xf32>
    %33 = vector.broadcast %32 : vector<2x8x1xf32> to vector<2x8x8xf32>
    %34 = arith.mulf %29, %33 : vector<2x8x8xf32>
    %35 = arith.truncf %34 : vector<2x8x8xf32> to vector<2x8x8xbf16>
    "tpu.trace_start"() <{level = 10 : i32, message = "bqk,bkd->bqd"}> : () -> ()
    %cst_18 = arith.constant dense<0.000000e+00> : vector<2x8x32xf32>
    %36 = tpu.matmul %35, %23, %cst_18 {dimension_numbers = #tpu.dot_dimension_numbers<[2], [1], [1], [2], [0, 0, 0, 1, 1, 2], [0], [0]>} : vector<2x8x8xbf16>, vector<2x8x32xbf16>, vector<2x8x32xf32> -> vector<2x8x32xf32>
    "tpu.trace_stop"() : () -> ()
    %37 = vector.shape_cast %36 : vector<2x8x32xf32> to vector<16x32xf32>
    %38 = arith.truncf %37 : vector<16x32xf32> to vector<16x32xbf16>
    %c0_19 = arith.constant 0 : index
    %c0_20 = arith.constant 0 : index
    %39 = vector.load %arg4[%c0_19, %c0_20] : memref<32x32xbf16, #tpu.memory_space<vmem>>, vector<32x32xbf16>
    %cst_21 = arith.constant dense<0.000000e+00> : vector<16x32xf32>
    %40 = tpu.matmul %38, %39, %cst_21 {dimension_numbers = #tpu.dot_dimension_numbers<[1], [0], [0], [1], [0, 0, 1, 1], [], []>} : vector<16x32xbf16>, vector<32x32xbf16>, vector<16x32xf32> -> vector<16x32xf32>
    %41 = arith.addf %40, %0 : vector<16x32xf32>
    %cst_22 = arith.constant dense<0.000000e+00> : vector<16xf32>
    %42 = vector.multi_reduction <add>, %41, %cst_22 [1] : vector<16x32xf32> to vector<16xf32>
    %43 = vector.shape_cast %42 : vector<16xf32> to vector<16x1xf32>
    %cst_23 = arith.constant 3.200000e+01 : f32
    %44 = vector.broadcast %cst_23 : f32 to vector<16x1xf32>
    %45 = arith.divf %43, %44 : vector<16x1xf32>
    %46 = vector.broadcast %45 : vector<16x1xf32> to vector<16x32xf32>
    %47 = arith.subf %41, %46 : vector<16x32xf32>
    %48 = arith.mulf %47, %47 : vector<16x32xf32>
    %cst_24 = arith.constant dense<0.000000e+00> : vector<16xf32>
    %49 = vector.multi_reduction <add>, %48, %cst_24 [1] : vector<16x32xf32> to vector<16xf32>
    %50 = vector.shape_cast %49 : vector<16xf32> to vector<16x1xf32>
    %cst_25 = arith.constant 3.200000e+01 : f32
    %51 = vector.broadcast %cst_25 : f32 to vector<16x1xf32>
    %52 = arith.divf %50, %51 : vector<16x1xf32>
    %53 = vector.broadcast %45 : vector<16x1xf32> to vector<16x32xf32>
    %54 = arith.subf %41, %53 : vector<16x32xf32>
    %cst_26 = arith.constant 9.99999974E-6 : f32
    %55 = vector.broadcast %cst_26 : f32 to vector<16x1xf32>
    %56 = arith.addf %52, %55 : vector<16x1xf32>
    %57 = math.rsqrt %56 : vector<16x1xf32>
    %58 = vector.broadcast %57 : vector<16x1xf32> to vector<16x32xf32>
    %59 = arith.mulf %54, %58 : vector<16x32xf32>
    %60 = vector.broadcast %4 : vector<1x32xf32> to vector<16x32xf32>
    %61 = arith.mulf %59, %60 : vector<16x32xf32>
    %62 = vector.broadcast %5 : vector<1x32xf32> to vector<16x32xf32>
    %63 = arith.addf %61, %62 : vector<16x32xf32>
    %64 = arith.truncf %63 : vector<16x32xf32> to vector<16x32xbf16>
    %c0_27 = arith.constant 0 : index
    %c0_28 = arith.constant 0 : index
    %65 = vector.load %arg5[%c0_27, %c0_28] : memref<32x16xbf16, #tpu.memory_space<vmem>>, vector<32x16xbf16>
    %cst_29 = arith.constant dense<0.000000e+00> : vector<16x16xf32>
    %66 = tpu.matmul %64, %65, %cst_29 {dimension_numbers = #tpu.dot_dimension_numbers<[1], [0], [0], [1], [0, 0, 1, 1], [], []>} : vector<16x32xbf16>, vector<32x16xbf16>, vector<16x16xf32> -> vector<16x16xf32>
    %67 = arith.truncf %1 : vector<16x32xf32> to vector<16x32xbf16>
    %c0_30 = arith.constant 0 : index
    %c0_31 = arith.constant 0 : index
    %68 = vector.load %arg6[%c0_30, %c0_31] : memref<32x48xbf16, #tpu.memory_space<vmem>>, vector<32x48xbf16>
    %cst_32 = arith.constant dense<0.000000e+00> : vector<16x48xf32>
    %69 = tpu.matmul %67, %68, %cst_32 {dimension_numbers = #tpu.dot_dimension_numbers<[1], [0], [0], [1], [0, 0, 1, 1], [], []>} : vector<16x32xbf16>, vector<32x48xbf16>, vector<16x48xf32> -> vector<16x48xf32>
    %70 = vector.extract_strided_slice %69 {offsets = [0, 0], sizes = [16, 16], strides = [1, 1]} : vector<16x48xf32> to vector<16x16xf32>
    %71 = vector.extract_strided_slice %69 {offsets = [0, 16], sizes = [16, 32], strides = [1, 1]} : vector<16x48xf32> to vector<16x32xf32>
    %cst_33 = arith.constant 2.500000e-01 : f32
    %72 = vector.broadcast %cst_33 : f32 to vector<16x16xf32>
    %73 = arith.mulf %66, %72 : vector<16x16xf32>
    %74 = vector.shape_cast %73 : vector<16x16xf32> to vector<2x8x16xf32>
    %75 = arith.truncf %74 : vector<2x8x16xf32> to vector<2x8x16xbf16>
    %76 = vector.shape_cast %70 : vector<16x16xf32> to vector<2x8x16xf32>
    %77 = arith.truncf %76 : vector<2x8x16xf32> to vector<2x8x16xbf16>
    %78 = vector.shape_cast %71 : vector<16x32xf32> to vector<2x8x32xf32>
    %79 = arith.truncf %78 : vector<2x8x32xf32> to vector<2x8x32xbf16>
    "tpu.trace_start"() <{level = 10 : i32, message = "bqa,bka->bqk"}> : () -> ()
    %cst_34 = arith.constant dense<0.000000e+00> : vector<2x8x8xf32>
    %80 = tpu.matmul %75, %77, %cst_34 {dimension_numbers = #tpu.dot_dimension_numbers<[2], [2], [1], [1], [0, 0, 0, 1, 1, 1], [0], [0]>} : vector<2x8x16xbf16>, vector<2x8x16xbf16>, vector<2x8x8xf32> -> vector<2x8x8xf32>
    "tpu.trace_stop"() : () -> ()
    %cst_35 = arith.constant dense<0xFF800000> : vector<2x8xf32>
    %81 = vector.multi_reduction <maximumf>, %80, %cst_35 [2] : vector<2x8x8xf32> to vector<2x8xf32>
    %82 = vector.shape_cast %81 : vector<2x8xf32> to vector<2x8x1xf32>
    %83 = vector.broadcast %82 : vector<2x8x1xf32> to vector<2x8x8xf32>
    %84 = arith.subf %80, %83 : vector<2x8x8xf32>
    %85 = math.exp %84 : vector<2x8x8xf32>
    %cst_36 = arith.constant dense<0.000000e+00> : vector<2x8xf32>
    %86 = vector.multi_reduction <add>, %85, %cst_36 [2] : vector<2x8x8xf32> to vector<2x8xf32>
    %87 = vector.shape_cast %86 : vector<2x8xf32> to vector<2x8x1xf32>
    %88 = tpu.reciprocal %87 {approx = true} : vector<2x8x1xf32> -> vector<2x8x1xf32>
    %89 = vector.broadcast %88 : vector<2x8x1xf32> to vector<2x8x8xf32>
    %90 = arith.mulf %85, %89 : vector<2x8x8xf32>
    %91 = arith.truncf %90 : vector<2x8x8xf32> to vector<2x8x8xbf16>
    "tpu.trace_start"() <{level = 10 : i32, message = "bqk,bkd->bqd"}> : () -> ()
    %cst_37 = arith.constant dense<0.000000e+00> : vector<2x8x32xf32>
    %92 = tpu.matmul %91, %79, %cst_37 {dimension_numbers = #tpu.dot_dimension_numbers<[2], [1], [1], [2], [0, 0, 0, 1, 1, 2], [0], [0]>} : vector<2x8x8xbf16>, vector<2x8x32xbf16>, vector<2x8x32xf32> -> vector<2x8x32xf32>
    "tpu.trace_stop"() : () -> ()
    %93 = vector.shape_cast %92 : vector<2x8x32xf32> to vector<16x32xf32>
    %94 = arith.truncf %93 : vector<16x32xf32> to vector<16x32xbf16>
    %c0_38 = arith.constant 0 : index
    %c0_39 = arith.constant 0 : index
    %95 = vector.load %arg7[%c0_38, %c0_39] : memref<32x32xbf16, #tpu.memory_space<vmem>>, vector<32x32xbf16>
    %cst_40 = arith.constant dense<0.000000e+00> : vector<16x32xf32>
    %96 = tpu.matmul %94, %95, %cst_40 {dimension_numbers = #tpu.dot_dimension_numbers<[1], [0], [0], [1], [0, 0, 1, 1], [], []>} : vector<16x32xbf16>, vector<32x32xbf16>, vector<16x32xf32> -> vector<16x32xf32>
    %97 = arith.addf %96, %63 : vector<16x32xf32>
    %cst_41 = arith.constant dense<0.000000e+00> : vector<16xf32>
    %98 = vector.multi_reduction <add>, %97, %cst_41 [1] : vector<16x32xf32> to vector<16xf32>
    %99 = vector.shape_cast %98 : vector<16xf32> to vector<16x1xf32>
    %cst_42 = arith.constant 3.200000e+01 : f32
    %100 = vector.broadcast %cst_42 : f32 to vector<16x1xf32>
    %101 = arith.divf %99, %100 : vector<16x1xf32>
    %102 = vector.broadcast %101 : vector<16x1xf32> to vector<16x32xf32>
    %103 = arith.subf %97, %102 : vector<16x32xf32>
    %104 = arith.mulf %103, %103 : vector<16x32xf32>
    %cst_43 = arith.constant dense<0.000000e+00> : vector<16xf32>
    %105 = vector.multi_reduction <add>, %104, %cst_43 [1] : vector<16x32xf32> to vector<16xf32>
    %106 = vector.shape_cast %105 : vector<16xf32> to vector<16x1xf32>
    %cst_44 = arith.constant 3.200000e+01 : f32
    %107 = vector.broadcast %cst_44 : f32 to vector<16x1xf32>
    %108 = arith.divf %106, %107 : vector<16x1xf32>
    %109 = vector.broadcast %101 : vector<16x1xf32> to vector<16x32xf32>
    %110 = arith.subf %97, %109 : vector<16x32xf32>
    %cst_45 = arith.constant 9.99999974E-6 : f32
    %111 = vector.broadcast %cst_45 : f32 to vector<16x1xf32>
    %112 = arith.addf %108, %111 : vector<16x1xf32>
    %113 = math.rsqrt %112 : vector<16x1xf32>
    %114 = vector.broadcast %113 : vector<16x1xf32> to vector<16x32xf32>
    %115 = arith.mulf %110, %114 : vector<16x32xf32>
    %116 = vector.broadcast %6 : vector<1x32xf32> to vector<16x32xf32>
    %117 = arith.mulf %115, %116 : vector<16x32xf32>
    %118 = vector.broadcast %7 : vector<1x32xf32> to vector<16x32xf32>
    %119 = arith.addf %117, %118 : vector<16x32xf32>
    %120 = arith.truncf %119 : vector<16x32xf32> to vector<16x32xbf16>
    %c0_46 = arith.constant 0 : index
    %c0_47 = arith.constant 0 : index
    %121 = vector.load %arg8[%c0_46, %c0_47] : memref<32x32xbf16, #tpu.memory_space<vmem>>, vector<32x32xbf16>
    %cst_48 = arith.constant dense<0.000000e+00> : vector<16x32xf32>
    %122 = tpu.matmul %120, %121, %cst_48 {dimension_numbers = #tpu.dot_dimension_numbers<[1], [0], [0], [1], [0, 0, 1, 1], [], []>} : vector<16x32xbf16>, vector<32x32xbf16>, vector<16x32xf32> -> vector<16x32xf32>
    %123 = vector.broadcast %2 : vector<1x32xf32> to vector<16x32xf32>
    %124 = arith.addf %122, %123 : vector<16x32xf32>
    %cst_49 = arith.constant 0.000000e+00 : f32
    %125 = vector.broadcast %cst_49 : f32 to vector<16x32xf32>
    %126 = arith.cmpf ogt, %124, %125 : vector<16x32xf32>
    %cst_50 = arith.constant 0.000000e+00 : f32
    %127 = vector.broadcast %cst_50 : f32 to vector<16x32xf32>
    %128 = arith.minimumf %124, %127 : vector<16x32xf32>
    %129 = math.exp %128 : vector<16x32xf32>
    %cst_51 = arith.constant 1.000000e+00 : f32
    %130 = vector.broadcast %cst_51 : f32 to vector<16x32xf32>
    %131 = arith.subf %129, %130 : vector<16x32xf32>
    %132 = arith.select %126, %124, %131 : vector<16x32xi1>, vector<16x32xf32>
    %133 = arith.truncf %132 : vector<16x32xf32> to vector<16x32xbf16>
    %c0_52 = arith.constant 0 : index
    %c0_53 = arith.constant 0 : index
    %134 = vector.load %arg9[%c0_52, %c0_53] : memref<32x32xbf16, #tpu.memory_space<vmem>>, vector<32x32xbf16>
    %cst_54 = arith.constant dense<0.000000e+00> : vector<16x32xf32>
    %135 = tpu.matmul %133, %134, %cst_54 {dimension_numbers = #tpu.dot_dimension_numbers<[1], [0], [0], [1], [0, 0, 1, 1], [], []>} : vector<16x32xbf16>, vector<32x32xbf16>, vector<16x32xf32> -> vector<16x32xf32>
    %136 = vector.broadcast %3 : vector<1x32xf32> to vector<16x32xf32>
    %137 = arith.addf %135, %136 : vector<16x32xf32>
    %138 = arith.addf %119, %137 : vector<16x32xf32>
    %cst_55 = arith.constant dense<0.000000e+00> : vector<16xf32>
    %139 = vector.multi_reduction <add>, %138, %cst_55 [1] : vector<16x32xf32> to vector<16xf32>
    %140 = vector.shape_cast %139 : vector<16xf32> to vector<16x1xf32>
    %cst_56 = arith.constant 3.200000e+01 : f32
    %141 = vector.broadcast %cst_56 : f32 to vector<16x1xf32>
    %142 = arith.divf %140, %141 : vector<16x1xf32>
    %143 = vector.broadcast %142 : vector<16x1xf32> to vector<16x32xf32>
    %144 = arith.subf %138, %143 : vector<16x32xf32>
    %145 = arith.mulf %144, %144 : vector<16x32xf32>
    %cst_57 = arith.constant dense<0.000000e+00> : vector<16xf32>
    %146 = vector.multi_reduction <add>, %145, %cst_57 [1] : vector<16x32xf32> to vector<16xf32>
    %147 = vector.shape_cast %146 : vector<16xf32> to vector<16x1xf32>
    %cst_58 = arith.constant 3.200000e+01 : f32
    %148 = vector.broadcast %cst_58 : f32 to vector<16x1xf32>
    %149 = arith.divf %147, %148 : vector<16x1xf32>
    %150 = vector.broadcast %142 : vector<16x1xf32> to vector<16x32xf32>
    %151 = arith.subf %138, %150 : vector<16x32xf32>
    %cst_59 = arith.constant 9.99999974E-6 : f32
    %152 = vector.broadcast %cst_59 : f32 to vector<16x1xf32>
    %153 = arith.addf %149, %152 : vector<16x1xf32>
    %154 = math.rsqrt %153 : vector<16x1xf32>
    %155 = vector.broadcast %154 : vector<16x1xf32> to vector<16x32xf32>
    %156 = arith.mulf %151, %155 : vector<16x32xf32>
    %157 = vector.broadcast %8 : vector<1x32xf32> to vector<16x32xf32>
    %158 = arith.mulf %156, %157 : vector<16x32xf32>
    %159 = vector.broadcast %9 : vector<1x32xf32> to vector<16x32xf32>
    %160 = arith.addf %158, %159 : vector<16x32xf32>
    %c0_60 = arith.constant 0 : index
    %c0_61 = arith.constant 0 : index
    %161 = vector.load %arg11[%c0_60, %c0_61] : memref<16x32xf32, #tpu.memory_space<vmem>>, vector<16x32xf32>
    tpu.vector_store %arg11[%c0_60, %c0_61], %160 {strides = array<i32>} : memref<16x32xf32, #tpu.memory_space<vmem>>, vector<16x32xf32>,
    return
  }
  func.func @transform_0(%arg0: i32) -> (i32, i32) {
    %c0_i32 = arith.constant 0 : i32
    %c0_i32_0 = arith.constant 0 : i32
    %c0_i32_1 = arith.constant 0 : i32
    return %c0_i32, %c0_i32_0 : i32, i32
  }
  func.func @transform_1(%arg0: i32) -> (i32, i32) {
    %c0_i32 = arith.constant 0 : i32
    %c0_i32_0 = arith.constant 0 : i32
    %c0_i32_1 = arith.constant 0 : i32
    return %c0_i32, %c0_i32_0 : i32, i32
  }
  func.func @transform_2(%arg0: i32) -> (i32, i32) {
    %c0_i32 = arith.constant 0 : i32
    %c0_i32_0 = arith.constant 0 : i32
    %c0_i32_1 = arith.constant 0 : i32
    return %c0_i32, %c0_i32_0 : i32, i32
  }
  func.func @transform_3(%arg0: i32) -> (i32, i32) {
    %c0_i32 = arith.constant 0 : i32
    %c0_i32_0 = arith.constant 0 : i32
    %c0_i32_1 = arith.constant 0 : i32
    return %c0_i32, %c0_i32_0 : i32, i32
  }
  func.func @transform_4(%arg0: i32) -> (i32, i32) {
    %c0_i32 = arith.constant 0 : i32
    %c0_i32_0 = arith.constant 0 : i32
    %c0_i32_1 = arith.constant 0 : i32
    return %c0_i32, %c0_i32_0 : i32, i32
  }
  func.func @transform_5(%arg0: i32) -> (i32, i32) {
    %c0_i32 = arith.constant 0 : i32
    %c0_i32_0 = arith.constant 0 : i32
    %c0_i32_1 = arith.constant 0 : i32
    return %c0_i32, %c0_i32_0 : i32, i32
  }
  func.func @transform_6(%arg0: i32) -> (i32, i32) {
    %c0_i32 = arith.constant 0 : i32
    %c0_i32_0 = arith.constant 0 : i32
    %c0_i32_1 = arith.constant 0 : i32
    return %c0_i32, %c0_i32_0 : i32, i32
  }
  func.func @transform_7(%arg0: i32) -> (i32, i32) {
    %c0_i32 = arith.constant 0 : i32
    %c0_i32_0 = arith.constant 0 : i32
    %c0_i32_1 = arith.constant 0 : i32
    return %c0_i32, %c0_i32_0 : i32, i32
  }
  func.func @transform_8(%arg0: i32) -> (i32, i32) {
    %c0_i32 = arith.constant 0 : i32
    %c0_i32_0 = arith.constant 0 : i32
    %c0_i32_1 = arith.constant 0 : i32
    return %c0_i32, %c0_i32_0 : i32, i32
  }
  func.func @transform_9(%arg0: i32) -> (i32, i32) {
    %c0_i32 = arith.constant 0 : i32
    %c0_i32_0 = arith.constant 0 : i32
    %c0_i32_1 = arith.constant 0 : i32
    return %c0_i32, %c0_i32_0 : i32, i32
  }
  func.func @transform_10(%arg0: i32) -> (i32, i32) {
    %c0_i32 = arith.constant 0 : i32
    %c0_i32_0 = arith.constant 0 : i32
    %c0_i32_1 = arith.constant 0 : i32
    return %c0_i32, %c0_i32_0 : i32, i32
  }
}

</mosaic_0001>

<bundles_post_ra>
// kernel: tpu_custom_call.1
= control target key start
LH: loop header
LB: loop body
LE: loop exit
PB: predicated region body
PF: predicated region fallthrough
CT: control target
= control target key end

     0   :  { %15 = vsyncpa [#allocation3], 0  ;;  %s1854_s0 = inlined_call_operand.vmem [shape: f32[16,32], index: 0, kind: input, shape index: {}]   ;;  %s1855_s1 = inlined_call_operand.hbm [shape: f32[16,32], index: 1, kind: input, shape index: {}]   ;;  %s1856_s2 = inlined_call_operand.hbm [shape: bf16[32,64], index: 2, kind: input, shape index: {}]   ;;  %s1857_s3 = inlined_call_operand.vmem [shape: bf16[32,32], index: 3, kind: input, shape index: {}]   ;;  %s1858_s4 = inlined_call_operand.vmem [shape: bf16[32,16], index: 4, kind: input, shape index: {}]   ;;  %s1859_s5 = inlined_call_operand.hbm [shape: bf16[32,48], index: 5, kind: input, shape index: {}]   ;;  %s1860_s6 = inlined_call_operand.hbm [shape: bf16[32,32], index: 6, kind: input, shape index: {}]   ;;  %s1861_s7 = inlined_call_operand.vmem [shape: bf16[32,32], index: 7, kind: input, shape index: {}]   ;;  %s1862_s8 = inlined_call_operand.hbm [shape: bf16[32,32], index: 8, kind: input, shape index: {}]   ;;  %s1863_s9 = inlined_call_operand.vmem [shape: f32[8,32], index: 9, kind: input, shape index: {}]   ;;  %s1864_s10 = inlined_call_operand.hbm [shape: f32[16,32], index: 10, kind: output, shape index: {}]  }
   0x1   :  { %16 = vsyncpa [#allocation6], 0 }
   0x2   :  { %17 = vsyncpa [#allocation9], 0 }
   0x3   :  { %18 = vsyncpa [#allocation4], 0  ;;  %s1530_s13 = smov [#allocation5]   ;;  %s1390_s17 = scalar_lea.hbm %s1856_s2, 256 }
   0x4   :  { %s38_s14 = sshll.u32 %s1530_s13, 4  ;;  %p1391_p0 = scmp.ne.s32.totalorder %s1856_s2, %s1390_s17  ;;  %s39_s14 = int_to_ptr.vmem [resolvable:$true] %s38_s14 }
   0x5   :  { %p1394_p1 = scmp.lt.u32.totalorder %s1390_s17, %s1856_s2 }
   0x7   :  { %p1396_p2 = pnand %p1394_p1, %p1391_p0 }
   0x9   :  { %1399 = shalt.err (!%p1396_p2)
}
   0xa   :  { %s1400_s22 = scalar_lea.vmem %s39_s14, 256  ;;  %p1405_p4 = scmp.lt.s32.totalorder %s39_s14, %s39_s14 }
   0xb   :  { %p1401_p3 = scmp.ne.s32.totalorder %s39_s14, %s1400_s22  ;;  %p1406_p5 = scmp.lt.s32.totalorder %s1400_s22, %s1400_s22 }
   0xd   :  { %p1407_p6 = por %p1406_p5, %p1405_p4 }
   0xf   :  { %p1408_p7 = pnand %p1407_p6, %p1401_p3 }
  0x11   :  { %1411 = shalt.err (!%p1408_p7)
}
  0x12   :  { %s1531_s23 = smov 64   ;;  %s1532_s24 = smov 4  }
  0x13   :  { %44 = dma.hbm_to_vmem [thread:$0]  %s1856_s2, 256, %s39_s14, [#allocation6], %s1531_s23, %s1531_s23, %s1532_s24  }
  0x14   :  { %s1533_s27 = smov [#allocation8]   ;;  %s1534_s29 = smov [#allocation2]  }
  0x15   :  { %s66_s28 = sshll.u32 %s1533_s27, 4  ;;  %s26_s30 = sshll.u32 %s1534_s29, 4  ;;  %s67_s28 = int_to_ptr.vmem [resolvable:$true] %s66_s28  ;;  %s27_s30 = int_to_ptr.vmem [resolvable:$true] %s26_s30 }
  0x16   :  { %s1412_s13 = scalar_lea.hbm %s1860_s6, 256 }
  0x17   :  { %p1413_p8 = scmp.ne.s32.totalorder %s1860_s6, %s1412_s13  ;;  %p1416_p9 = scmp.lt.u32.totalorder %s1412_s13, %s1860_s6 }
  0x19   :  { %p1418_p10 = pnand %p1416_p9, %p1413_p8 }
  0x1b   :  { %1421 = shalt.err (!%p1418_p10)
}
  0x1c   :  { %s1422_s2 = scalar_lea.vmem %s67_s28, 256  ;;  %p1427_p12 = scmp.lt.s32.totalorder %s67_s28, %s67_s28 }
  0x1d   :  { %p1423_p11 = scmp.ne.s32.totalorder %s67_s28, %s1422_s2  ;;  %p1428_p13 = scmp.lt.s32.totalorder %s1422_s2, %s1422_s2 }
  0x1f   :  { %p1429_p0 = por %p1428_p13, %p1427_p12 }
  0x21   :  { %p1430_p1 = pnand %p1429_p0, %p1423_p11 }
  0x23   :  { %1433 = shalt.err (!%p1430_p1)
}
  0x24   :  { %72 = dma.hbm_to_vmem [thread:$0]  %s1860_s6, 256, %s67_s28, [#allocation9], %s1531_s23, %s1531_s23, %s1532_s24  }
  0x25   :  { %s1434_s22 = scalar_lea.hbm %s1855_s1, 256 }
  0x26   :  { %p1435_p2 = scmp.ne.s32.totalorder %s1855_s1, %s1434_s22  ;;  %p1438_p3 = scmp.lt.u32.totalorder %s1434_s22, %s1855_s1 }
  0x28   :  { %p1440_p4 = pnand %p1438_p3, %p1435_p2 }
  0x2a   :  { %1443 = shalt.err (!%p1440_p4)
}
  0x2b   :  { %s1444_s11 = scalar_lea.vmem %s27_s30, 256  ;;  %p1449_p6 = scmp.lt.s32.totalorder %s27_s30, %s27_s30 }
  0x2c   :  { %p1445_p5 = scmp.ne.s32.totalorder %s27_s30, %s1444_s11  ;;  %p1450_p7 = scmp.lt.s32.totalorder %s1444_s11, %s1444_s11 }
  0x2e   :  { %p1451_p8 = por %p1450_p7, %p1449_p6 }
  0x30   :  { %p1452_p9 = pnand %p1451_p8, %p1445_p5 }
  0x32   :  { %1455 = shalt.err (!%p1452_p9)
}
  0x33   :  { %s1535_s6 = smov 128   ;;  %s1536_s28 = smov 8  }
  0x34   :  { %32 = dma.hbm_to_vmem [thread:$0]  %s1855_s1, 256, %s27_s30, [#allocation3], %s1535_s6, %s1535_s6, %s1536_s28  }
  0x35   :  { %s1537_s15 = smov [#allocation7]   ;;  %s1538_s17 = smov [#allocation10]  }
  0x36   :  { %s54_s16 = sshll.u32 %s1537_s15, 4  ;;  %s80_s18 = sshll.u32 %s1538_s17, 4  ;;  %s55_s16 = int_to_ptr.vmem [resolvable:$true] %s54_s16  ;;  %s81_s18 = int_to_ptr.vmem [resolvable:$true] %s80_s18 }
  0x37   :  { %s1456_s19 = scalar_lea.hbm %s1859_s5, 256 }
  0x38   :  { %p1457_p10 = scmp.ne.s32.totalorder %s1859_s5, %s1456_s19  ;;  %p1460_p11 = scmp.lt.u32.totalorder %s1456_s19, %s1859_s5 }
  0x3a   :  { %p1462_p12 = pnand %p1460_p11, %p1457_p10 }
  0x3c   :  { %1465 = shalt.err (!%p1462_p12)
}
  0x3d   :  { %s1466_s1 = scalar_lea.vmem %s55_s16, 256  ;;  %p1471_p0 = scmp.lt.s32.totalorder %s55_s16, %s55_s16 }
  0x3e   :  { %p1467_p13 = scmp.ne.s32.totalorder %s55_s16, %s1466_s1  ;;  %p1472_p1 = scmp.lt.s32.totalorder %s1466_s1, %s1466_s1 }
  0x40   :  { %p1473_p2 = por %p1472_p1, %p1471_p0 }
  0x42   :  { %p1474_p3 = pnand %p1473_p2, %p1467_p13 }
  0x44   :  { %1477 = shalt.err (!%p1474_p3)
}
  0x45   :  { %60 = dma.hbm_to_vmem [thread:$0]  %s1859_s5, 256, %s55_s16, [#allocation6], %s1531_s23, %s1531_s23, %s1532_s24  }
  0x46   :  { %s1478_s11 = scalar_lea.hbm %s1862_s8, 256 }
  0x47   :  { %p1479_p4 = scmp.ne.s32.totalorder %s1862_s8, %s1478_s11  ;;  %p1482_p5 = scmp.lt.u32.totalorder %s1478_s11, %s1862_s8 }
  0x49   :  { %p1484_p6 = pnand %p1482_p5, %p1479_p4 }
  0x4b   :  { %1487 = shalt.err (!%p1484_p6)
}
  0x4c   :  { %s1488_s2 = scalar_lea.vmem %s81_s18, 256  ;;  %p1493_p8 = scmp.lt.s32.totalorder %s81_s18, %s81_s18 }
  0x4d   :  { %p1489_p7 = scmp.ne.s32.totalorder %s81_s18, %s1488_s2  ;;  %p1494_p9 = scmp.lt.s32.totalorder %s1488_s2, %s1488_s2 }
  0x4f   :  { %p1495_p10 = por %p1494_p9, %p1493_p8 }
  0x51   :  { %p1496_p11 = pnand %p1495_p10, %p1489_p7 }
  0x53   :  { %1499 = shalt.err (!%p1496_p11)
}
  0x54   :  { %86 = dma.hbm_to_vmem [thread:$0]  %s1862_s8, 256, %s81_s18, [#allocation9], %s1531_s23, %s1531_s23, %s1532_s24  }
  0x55   :  { %1522 = dma.done.wait [#allocation3], 256  }
  0x56   :  { %1523 = vsyncadd [#allocation3], 4294967040 }
  0x57   :  { %1524 = dma.done.wait [#allocation6], 512  }
  0x58   :  { %1525 = vsyncadd [#allocation6], 4294966784 }
  0x59   :  { %1526 = dma.done.wait [#allocation9], 512  }
  0x5a   :  { %1527 = vsyncadd [#allocation9], 4294966784  ;;  %v1539_v0 = vmov 0.0   ;;  %vm1540_vm0 = vmmov 0   ;;  %v1344_v1 = vld [vmem:[#allocation5] sm:$0xff]   ;;  %v1345_v2 = vld [vmem:[#allocation5 + $0x8] sm:$0xff]  }
  0x5b   :  { %1226 = vmatprep.subr.bf16.mxu0 %v1539_v0  ;;  %1230 = vmatprep.mubr.msk.bf16.mxu0 %vm1540_vm0, %v1539_v0  ;;  %v1683_v3 = vld [vmem:[%s1854_s0] sm:$0xff]  ;;  %v1688_v4 = vld [vmem:[%s1854_s0 + $0x8] sm:$0xff]  ;;  %vm134_vm1 = vcmask 261120   ;;  %s1541_s0 = smov 112   ;;  %vm188_vm2 = vcmask 130048   ;;  %vm284_vm3 = vcmask 64512  }
  0x5c   :  { %1234 = vmatprep.subr.bf16.mxu1 %v1539_v0  ;;  %1236 = vmatprep.mubr.msk.bf16.mxu1 %vm1540_vm0, %v1539_v0  ;;  %v117_v5 = vpack.c.bf16 %v1688_v4, %v1683_v3  ;;  %s1542_s14 = smov 96   ;;  %vm314_vm4 = vcmask 1043456   ;;  %v1346_v52 = vld [vmem:[%s1857_s3] sm:$0xff]   ;;  %v1347_v53 = vld [vmem:[%s1857_s3 + $0x8] sm:$0xff]   ;;  %s1543_s20 = smov [#allocation11]  }
  0x5d   :  { %1227 = vmatpush3.bf16.msra.mxu0 %v1344_v1  ;;  %s1136_s21 = sshll.u32 %s1543_s20, 4  ;;  %s1137_s21 = int_to_ptr.vmem [resolvable:$true] %s1136_s21 }
  0x5e   :  { %1228 = vmatprep.subr.bf16.mxu0 %v1539_v0  ;;  %s1500_s22 = scalar_lea.vmem %s1137_s21, 256  ;;  %p1505_p13 = scmp.lt.s32.totalorder %s1137_s21, %s1137_s21 }
  0x5f   :  { %p1501_p12 = scmp.ne.s32.totalorder %s1137_s21, %s1500_s22  ;;  %p1506_p0 = scmp.lt.s32.totalorder %s1500_s22, %s1500_s22 }
  0x61   :  { %1229 = vmatpush3.bf16.msra.mxu0 %v1345_v2  ;;  %p1507_p1 = por %p1506_p0, %p1505_p13 }
  0x62   :  { %1240 = vmatprep.subr.bf16.mxu0 %v1539_v0 }
  0x63   :  { %p1508_p2 = pnand %p1507_p1, %p1501_p12 }
  0x64   :  { %1231 = vmatmul.mubr.msk.bf16.vlgmr.msra.gmra.mrb[0].mxu0 %vm134_vm1, %v117_v5 }
  0x65   :  { %1242 = vmatprep.mubr.msk.bf16.mxu0 %vm1540_vm0, %v1539_v0 }
 0x137   :  { %v172_v6 = vpop.f32.mrb[0].mxu0 }
 0x138   :  { %v1232_v7 = vpop.f32.mrb[1].mxu0  ;;  %v183_v8 = vpack.c.bf16 %v172_v6, %v172_v6  ;;  %v179_v14 = vmul.f32 0.25, %v172_v6 }
 0x139   :  { %v175_v9 = vpop.f32.mrb[2].mxu0 }
 0x13a   :  { %186 = vrot.lane.b32.xlu0 %v183_v8, %s1541_s0  ;;  %v1233_v10 = vpop.f32.mrb[3].mxu0  ;;  %v184_v11 = vpack.c.bf16 %v175_v9, %v175_v9  ;;  %v181_v17 = vpack.c.bf16 %v179_v14, %v179_v14  ;;  %v180_v18 = vmul.f32 0.25, %v175_v9 }
 0x13c   :  { %v182_v19 = vpack.c.bf16 %v180_v18, %v180_v18  ;;  %v1348_v18 = vld [vmem:[#allocation7] sm:$0xff]  }
 0x13e   :  { %236 = vrot.lane.b32.xlu0 %v184_v11, %s1541_s0 }
 0x1ac   :  { %v187_v12 = vpop.permute.xlu0 %186 }
 0x1ad   :  { %v193_v13 = vsel %vm188_vm2, %v187_v12, 0 }
 0x1ae   :  { %1235 = vmatpush3.bf16.xpose.msra.mxu1 %v193_v13 }
 0x1af   :  { %1246 = vmatprep.subr.bf16.mxu1 %v1539_v0 }
 0x1b0   :  { %v237_v15 = vpop.permute.xlu0 %236 }
 0x1b1   :  { %v242_v16 = vsel %vm188_vm2, %v237_v15, 0 }
 0x1b2   :  { %1241 = vmatpush3.bf16.xpose.msra.mxu0 %v242_v16 }
 0x1b3   :  { %1252 = vmatprep.subr.bf16.mxu0 %v1539_v0 }
 0x1b5   :  { %1237 = vmatmul.mubr.msk.bf16.vlgmr.msra.gmra.mrb[0].mxu1 %vm188_vm2, %v181_v17 }
 0x1b6   :  { %1248 = vmatprep.mubr.msk.bf16.mxu1 %vm1540_vm0, %v1539_v0 }
 0x1b9   :  { %1243 = vmatmul.mubr.msk.bf16.vlgmr.msra.gmra.mrb[4].mxu0 %vm188_vm2, %v182_v19  ;;  %v1349_v19 = vld [vmem:[#allocation7 + $0x8] sm:$0xff]  }
 0x1ba   :  { %1254 = vmatprep.mubr.msk.bf16.mxu0 %vm1540_vm0, %v1539_v0 }
 0x288   :  { %v229_v20 = vpop.f32.mrb[0].mxu1 }
 0x289   :  { %v1238_v21 = vpop.f32.mrb[1].mxu1  ;;  %v285_v22 = vsel %vm284_vm3, %v229_v20, -inf }
 0x28a   :  { %286 = vmax.xlane.f32.xlu1 %v285_v22  ;;  %v232_v23 = vpop.f32.mrb[2].mxu1  ;;  %v108_v21 = vld [vmem:[#allocation2 + $0x8] sm:$0xff] }
 0x28b   :  { %v1239_v24 = vpop.f32.mrb[3].mxu1  ;;  %v1350_v23 = vld [vmem:[%s1858_s4] sm:$0xff]  }
 0x28c   :  { %v278_v25 = vpop.f32.mrb[4].mxu0  ;;  %v1351_v24 = vld [vmem:[%s1858_s4 + $0x8] sm:$0xff]  }
 0x28d   :  { %v1244_v26 = vpop.f32.mrb[5].mxu0  ;;  %v288_v27 = vsel %vm284_vm3, %v278_v25, -inf }
 0x28e   :  { %289 = vmax.xlane.f32.xlu1 %v288_v27  ;;  %v281_v28 = vpop.f32.mrb[6].mxu0 }
 0x28f   :  { %v1245_v29 = vpop.f32.mrb[7].mxu0 }
 0x29f   :  { %309 = vrot.lane.b32.xlu1 %v183_v8, %s1542_s14 }
 0x317   :  { %v287_v30 = vpop.xlane.xlu1 %286 }
 0x318   :  { %v291_v31 = vsub.f32 %v229_v20, %v287_v30  ;;  %v107_v20 = vld [vmem:[#allocation2] sm:$0xff] }
 0x319   :  { %v567_v22 = vpack.c.bf16 %v108_v21, %v107_v20 }
 0x31a   :  { %v293_v32 = vmul.f32 1.442695, %v291_v31 }
 0x31b   :  { %v290_v33 = vpop.xlane.xlu1 %289 }
 0x31c   :  { %1358 = vpow2.f32 %v293_v32  ;;  %v292_v34 = vsub.f32 %v278_v25, %v290_v33  ;;  %v1160_v33 = vld [vmem:[%s1863_s9 + $0x2] ss:$0 sm:$0xff] }
 0x31e   :  { %v295_v35 = vmul.f32 1.442695, %v292_v34 }
 0x31f   :  { %v310_v36 = vpop.permute.xlu1 %309 }
 0x320   :  { %1360 = vpow2.f32 %v295_v35  ;;  %v316_v37 = vsel %vm314_vm4, %v310_v36, 0 }
 0x321   :  { %1247 = vmatpush3.bf16.msra.mxu1 %v316_v37  ;;  %v1161_v37 = vld [vmem:[%s1863_s9 + $0x3] ss:$0 sm:$0xff] }
 0x322   :  { %1258 = vmatprep.subr.bf16.mxu1 %v1539_v0 }
 0x326   :  { %v1359_v38 = vpop.eup %1358 }
 0x327   :  { %v297_v39 = vsel %vm284_vm3, %v1359_v38, 0.0 }
 0x328   :  { %298 = vadd.xlane.f32.xlu0 %v297_v39 }
 0x32a   :  { %v1361_v40 = vpop.eup %1360 }
 0x32b   :  { %v300_v41 = vsel %vm284_vm3, %v1361_v40, 0.0 }
 0x32c   :  { %301 = vadd.xlane.f32.xlu1 %v300_v41 }
 0x33d   :  { %358 = vrot.lane.b32.xlu1 %v184_v11, %s1542_s14 }
 0x3b5   :  { %v299_v42 = vpop.xlane.xlu0 %298 }
 0x3b6   :  { %1362 = vrcp.f32 %v299_v42 }
 0x3b9   :  { %v302_v43 = vpop.xlane.xlu1 %301 }
 0x3ba   :  { %1364 = vrcp.f32 %v302_v43 }
 0x3bd   :  { %v359_v44 = vpop.permute.xlu1 %358 }
 0x3be   :  { %v364_v45 = vsel %vm314_vm4, %v359_v44, 0 }
 0x3bf   :  { %1253 = vmatpush3.bf16.msra.mxu0 %v364_v45 }
 0x3c0   :  { %v1363_v46 = vpop.eup %1362  ;;  %1266 = vmatprep.subr.bf16.mxu0 %v1539_v0 }
 0x3c1   :  { %v305_v47 = vmul.f32 %v1363_v46, %v1359_v38 }
 0x3c3   :  { %v307_v48 = vpack.c.bf16 %v305_v47, %v305_v47 }
 0x3c4   :  { %v1365_v49 = vpop.eup %1364 }
 0x3c5   :  { %v306_v50 = vmul.f32 %v1365_v49, %v1361_v40  ;;  %1249 = vmatmul.mubr.msk.bf16.vlgmr.msra.gmra.mrb[4].mxu1 %vm284_vm3, %v307_v48 }
 0x3c6   :  { %1262 = vmatprep.mubr.msk.bf16.mxu1 %vm1540_vm0, %v1539_v0  ;;  %1259 = vmatpush3.bf16.msra.mxu1 %v1346_v52 }
 0x3c7   :  { %v308_v51 = vpack.c.bf16 %v306_v50, %v306_v50  ;;  %1260 = vmatprep.subr.bf16.mxu1 %v1539_v0 }
 0x3c9   :  { %1255 = vmatmul.mubr.msk.bf16.vlgmr.msra.gmra.mrb[8].mxu0 %vm284_vm3, %v308_v51 }
 0x3ca   :  { %1270 = vmatprep.mubr.msk.bf16.mxu0 %vm1540_vm0, %v1539_v0  ;;  %1261 = vmatpush3.bf16.msra.mxu1 %v1347_v53 }
 0x3cb   :  { %1274 = vmatprep.subr.bf16.mxu1 %v1539_v0  ;;  %1267 = vmatpush3.bf16.msra.mxu0 %v1350_v23 }
 0x3cc   :  { %1268 = vmatprep.subr.bf16.mxu0 %v1539_v0 }
 0x3cf   :  { %1269 = vmatpush3.bf16.msra.mxu0 %v1351_v24 }
 0x3d0   :  { %1282 = vmatprep.subr.bf16.mxu0 %v1539_v0 }
 0x498   :  { %v352_v54 = vpop.f32.mrb[4].mxu1 }
 0x499   :  { %v1250_v55 = vpop.f32.mrb[5].mxu1 }
 0x49a   :  { %v355_v56 = vpop.f32.mrb[6].mxu1 }
 0x49b   :  { %v1251_v57 = vpop.f32.mrb[7].mxu1 }
 0x49c   :  { %v400_v58 = vpop.f32.mrb[8].mxu0 }
 0x49d   :  { %v406_v59 = vpack.c.bf16 %v400_v58, %v352_v54  ;;  %v1256_v60 = vpop.f32.mrb[9].mxu0 }
 0x49e   :  { %v403_v61 = vpop.f32.mrb[10].mxu0 }
 0x49f   :  { %v1257_v62 = vpop.f32.mrb[11].mxu0  ;;  %1263 = vmatmul.mubr.msk.bf16.vlgmr.msra.gmra.mrb[8].mxu1 %vm134_vm1, %v406_v59 }
 0x4a0   :  { %1278 = vmatprep.mubr.msk.bf16.mxu1 %vm1540_vm0, %v1539_v0  ;;  %1275 = vmatpush3.bf16.msra.mxu1 %v1348_v18 }
 0x4a1   :  { %1276 = vmatprep.subr.bf16.mxu1 %v1539_v0 }
 0x4a4   :  { %1277 = vmatpush3.bf16.msra.mxu1 %v1349_v19 }
 0x4a5   :  { %1288 = vmatprep.subr.bf16.mxu1 %v1539_v0 }
 0x4a7   :  { %1279 = vmatmul.mubr.msk.bf16.vlgmr.msra.gmra.mrb[12].mxu1 %vm134_vm1, %v567_v22 }
 0x4a8   :  { %1290 = vmatprep.mubr.msk.bf16.mxu1 %vm1540_vm0, %v1539_v0 }
 0x572   :  { %v460_v63 = vpop.f32.mrb[8].mxu1 }
 0x573   :  { %v461_v1 = vadd.f32 %v460_v63, %v1683_v3  ;;  %v1264_v2 = vpop.f32.mrb[9].mxu1 }
 0x574   :  { %v463_v5 = vpop.f32.mrb[10].mxu1 }
 0x575   :  { %v464_v6 = vadd.f32 %v463_v5, %v1688_v4  ;;  %v1265_v7 = vpop.f32.mrb[11].mxu1  ;;  %v467_v8 = vsel %vm134_vm1, %v461_v1, 0.0 }
 0x576   :  { %468 = vadd.xlane.f32.xlu1 %v467_v8 }
 0x577   :  { %v470_v9 = vsel %vm134_vm1, %v464_v6, 0.0 }
 0x578   :  { %471 = vadd.xlane.f32.xlu0 %v470_v9 }
 0x57a   :  { %v621_v42 = vpop.f32.mrb[12].mxu1 }
 0x57b   :  { %v632_v43 = vpack.c.bf16 %v621_v42, %v621_v42  ;;  %v1280_v44 = vpop.f32.mrb[13].mxu1 }
 0x57c   :  { %v624_v45 = vpop.f32.mrb[14].mxu1 }
 0x57d   :  { %v638_v46 = vsel %vm188_vm2, %v632_v43, 0  ;;  %v633_v47 = vpack.c.bf16 %v624_v45, %v624_v45  ;;  %v1281_v48 = vpop.f32.mrb[15].mxu1 }
 0x57f   :  { %v684_v49 = vsel %vm188_vm2, %v633_v47, 0 }
 0x580   :  { %1289 = vmatpush3.bf16.xpose.msra.mxu1 %v684_v49 }
 0x581   :  { %1300 = vmatprep.subr.bf16.mxu1 %v1539_v0 }
 0x587   :  { %800 = vrot.lane.b32.xlu1 %v633_v47, %s1541_s0 }
 0x603   :  { %v469_v10 = vpop.xlane.xlu1 %468 }
 0x604   :  { %v474_v11 = vmul.f32 0.03125, %v469_v10 }
 0x605   :  { %v472_v12 = vpop.xlane.xlu0 %471 }
 0x606   :  { %v476_v13 = vsub.f32 %v461_v1, %v474_v11  ;;  %v475_v14 = vmul.f32 0.03125, %v472_v12 }
 0x607   :  { %v801_v54 = vpop.permute.xlu1 %800 }
 0x608   :  { %v477_v15 = vsub.f32 %v464_v6, %v475_v14  ;;  %v478_v16 = vmul.f32 %v476_v13, %v476_v13  ;;  %v806_v59 = vsel %vm314_vm4, %v801_v54, 0 }
 0x60a   :  { %v480_v3 = vsel %vm134_vm1, %v478_v16, 0.0  ;;  %v479_v17 = vmul.f32 %v477_v15, %v477_v15 }
 0x60b   :  { %481 = vadd.xlane.f32.xlu0 %v480_v3 }
 0x60c   :  { %v483_v4 = vsel %vm134_vm1, %v479_v17, 0.0 }
 0x60f   :  { %484 = vadd.xlane.f32.xlu0 %v483_v4 }
 0x698   :  { %v482_v25 = vpop.xlane.xlu0 %481 }
 0x699   :  { %v486_v26 = vmul.f32 0.03125, %v482_v25 }
 0x69b   :  { %v488_v27 = vadd.f32 1e-05, %v486_v26 }
 0x69c   :  { %v485_v28 = vpop.xlane.xlu0 %484 }
 0x69d   :  { %1366 = vrsqrt.f32 %v488_v27  ;;  %v487_v29 = vmul.f32 0.03125, %v485_v28  ;;  %v1352_v27 = vld [vmem:[#allocation8] sm:$0xff]   ;;  %v1353_v28 = vld [vmem:[#allocation8 + $0x8] sm:$0xff]  }
 0x69f   :  { %v489_v30 = vadd.f32 1e-05, %v487_v29 }
 0x6a1   :  { %1368 = vrsqrt.f32 %v489_v30 }
 0x6a7   :  { %v1367_v31 = vpop.eup %1366 }
 0x6a8   :  { %v492_v32 = vmul.f32 %v1367_v31, %v476_v13 }
 0x6aa   :  { %v498_v35 = vmul.f32 %v1160_v33, %v492_v32 }
 0x6ab   :  { %v1369_v34 = vpop.eup %1368 }
 0x6ac   :  { %v493_v36 = vmul.f32 %v1369_v34, %v477_v15  ;;  %v1759_v39 = vadd.f32 %v1161_v37, %v498_v35 }
 0x6ae   :  { %v499_v38 = vmul.f32 %v1160_v33, %v493_v36 }
 0x6b0   :  { %v1761_v40 = vadd.f32 %v1161_v37, %v499_v38 }
 0x6b2   :  { %v506_v41 = vpack.c.bf16 %v1761_v40, %v1759_v39 }
 0x6b4   :  { %1271 = vmatmul.mubr.msk.bf16.vlgmr.msra.gmra.mrb[12].mxu0 %vm134_vm1, %v506_v41 }
 0x6b5   :  { %1284 = vmatprep.mubr.msk.bf16.mxu0 %vm1540_vm0, %v1539_v0  ;;  %1283 = vmatpush3.bf16.xpose.msra.mxu0 %v638_v46 }
 0x6b6   :  { %1294 = vmatprep.subr.bf16.mxu0 %v1539_v0 }
 0x787   :  { %v560_v50 = vpop.f32.mrb[12].mxu0 }
 0x788   :  { %v628_v51 = vmul.f32 0.25, %v560_v50  ;;  %v1272_v52 = vpop.f32.mrb[13].mxu0 }
 0x789   :  { %v563_v53 = vpop.f32.mrb[14].mxu0 }
 0x78a   :  { %v630_v55 = vpack.c.bf16 %v628_v51, %v628_v51  ;;  %v629_v56 = vmul.f32 0.25, %v563_v53  ;;  %v1273_v57 = vpop.f32.mrb[15].mxu0 }
 0x78b   :  { %v1355_v57 = vld [vmem:[%s1861_s7 + $0x8] sm:$0xff]  }
 0x78c   :  { %v631_v58 = vpack.c.bf16 %v629_v56, %v629_v56  ;;  %1285 = vmatmul.mubr.msk.bf16.vlgmr.msra.gmra.mrb[16].mxu0 %vm188_vm2, %v630_v55  ;;  %v1354_v56 = vld [vmem:[%s1861_s7] sm:$0xff]  }
 0x78d   :  { %1296 = vmatprep.mubr.msk.bf16.mxu0 %vm1540_vm0, %v1539_v0 }
 0x78e   :  { %1291 = vmatmul.mubr.msk.bf16.vlgmr.msra.gmra.mrb[16].mxu1 %vm188_vm2, %v631_v58 }
 0x78f   :  { %1301 = vmatpush3.bf16.msra.mxu1 %v806_v59  ;;  %1302 = vmatprep.mubr.msk.bf16.mxu1 %vm1540_vm0, %v1539_v0 }
 0x790   :  { %1314 = vmatprep.subr.bf16.mxu1 %v1539_v0 }
 0x85f   :  { %v674_v60 = vpop.f32.mrb[16].mxu0 }
 0x860   :  { %v1286_v61 = vpop.f32.mrb[17].mxu0  ;;  %v726_v62 = vsel %vm284_vm3, %v674_v60, -inf }
 0x861   :  { %v720_v63 = vpop.f32.mrb[16].mxu1  ;;  %727 = vmax.xlane.f32.xlu0 %v726_v62  ;;  %v677_v1 = vpop.f32.mrb[18].mxu0 }
 0x862   :  { %v1287_v2 = vpop.f32.mrb[19].mxu0  ;;  %v1292_v5 = vpop.f32.mrb[17].mxu1  ;;  %v729_v8 = vsel %vm284_vm3, %v720_v63, -inf }
 0x863   :  { %v723_v6 = vpop.f32.mrb[18].mxu1  ;;  %v1175_v2 = vld [vmem:[%s1863_s9 + $0x4] ss:$0 sm:$0xff] }
 0x864   :  { %v1293_v7 = vpop.f32.mrb[19].mxu1 }
 0x865   :  { %730 = vmax.xlane.f32.xlu0 %v729_v8 }
 0x8ee   :  { %v728_v9 = vpop.xlane.xlu0 %727 }
 0x8ef   :  { %v732_v10 = vsub.f32 %v674_v60, %v728_v9  ;;  %v1176_v9 = vld [vmem:[%s1863_s9 + $0x5] ss:$0 sm:$0xff] }
 0x8f1   :  { %v734_v11 = vmul.f32 1.442695, %v732_v10 }
 0x8f2   :  { %v731_v12 = vpop.xlane.xlu0 %730 }
 0x8f3   :  { %1370 = vpow2.f32 %v734_v11  ;;  %v733_v13 = vsub.f32 %v720_v63, %v731_v12 }
 0x8f5   :  { %v736_v14 = vmul.f32 1.442695, %v733_v13 }
 0x8f7   :  { %1372 = vpow2.f32 %v736_v14  ;;  %v1356_v14 = vld [vmem:[#allocation10] sm:$0xff]  }
 0x8fd   :  { %v1371_v15 = vpop.eup %1370 }
 0x8fe   :  { %v738_v16 = vsel %vm284_vm3, %v1371_v15, 0.0 }
 0x8ff   :  { %739 = vadd.xlane.f32.xlu0 %v738_v16  ;;  %v1177_v16 = vld [vmem:[%s1863_s9] ss:$0 sm:$0xff] }
 0x901   :  { %v1373_v3 = vpop.eup %1372 }
 0x902   :  { %v741_v17 = vsel %vm284_vm3, %v1373_v3, 0.0 }
 0x903   :  { %742 = vadd.xlane.f32.xlu0 %v741_v17 }
 0x919   :  { %751 = vrot.lane.b32.xlu0 %v632_v43, %s1541_s0 }
 0x98c   :  { %v740_v4 = vpop.xlane.xlu0 %739 }
 0x98d   :  { %1374 = vrcp.f32 %v740_v4 }
 0x990   :  { %v743_v18 = vpop.xlane.xlu0 %742 }
 0x991   :  { %1376 = vrcp.f32 %v743_v18 }
 0x994   :  { %v752_v19 = vpop.permute.xlu0 %751 }
 0x995   :  { %v757_v20 = vsel %vm314_vm4, %v752_v19, 0 }
 0x996   :  { %1295 = vmatpush3.bf16.msra.mxu0 %v757_v20 }
 0x997   :  { %v1375_v21 = vpop.eup %1374  ;;  %1306 = vmatprep.subr.bf16.mxu0 %v1539_v0 }
 0x998   :  { %v746_v22 = vmul.f32 %v1375_v21, %v1371_v15  ;;  %v1357_v15 = vld [vmem:[#allocation10 + $0x8] sm:$0xff]  }
 0x99a   :  { %v748_v23 = vpack.c.bf16 %v746_v22, %v746_v22 }
 0x99b   :  { %v1377_v24 = vpop.eup %1376 }
 0x99c   :  { %v747_v25 = vmul.f32 %v1377_v24, %v1373_v3  ;;  %1297 = vmatmul.mubr.msk.bf16.vlgmr.msra.gmra.mrb[20].mxu0 %vm284_vm3, %v748_v23 }
 0x99d   :  { %1310 = vmatprep.mubr.msk.bf16.mxu0 %vm1540_vm0, %v1539_v0  ;;  %1307 = vmatpush3.bf16.msra.mxu0 %v1352_v27 }
 0x99e   :  { %v749_v26 = vpack.c.bf16 %v747_v25, %v747_v25  ;;  %1308 = vmatprep.subr.bf16.mxu0 %v1539_v0 }
 0x9a0   :  { %1303 = vmatmul.mubr.msk.bf16.vlgmr.msra.gmra.mrb[20].mxu1 %vm284_vm3, %v749_v26 }
 0x9a1   :  { %1318 = vmatprep.mubr.msk.bf16.mxu1 %vm1540_vm0, %v1539_v0  ;;  %1309 = vmatpush3.bf16.msra.mxu0 %v1353_v28 }
 0x9a2   :  { %1322 = vmatprep.subr.bf16.mxu0 %v1539_v0  ;;  %1315 = vmatpush3.bf16.msra.mxu1 %v1354_v56 }
 0x9a3   :  { %1316 = vmatprep.subr.bf16.mxu1 %v1539_v0 }
 0x9a6   :  { %1317 = vmatpush3.bf16.msra.mxu1 %v1355_v57 }
 0xa6f   :  { %v793_v29 = vpop.f32.mrb[20].mxu0 }
 0xa70   :  { %v1298_v30 = vpop.f32.mrb[21].mxu0 }
 0xa71   :  { %v796_v31 = vpop.f32.mrb[22].mxu0 }
 0xa72   :  { %v1299_v32 = vpop.f32.mrb[23].mxu0  ;;  %v1183_v31 = vld [vmem:[%s1863_s9 + $0x1] ss:$0 sm:$0xff] }
 0xa73   :  { %v842_v33 = vpop.f32.mrb[20].mxu1 }
 0xa74   :  { %v848_v34 = vpack.c.bf16 %v842_v33, %v793_v29  ;;  %v1304_v35 = vpop.f32.mrb[21].mxu1 }
 0xa75   :  { %v845_v36 = vpop.f32.mrb[22].mxu1 }
 0xa76   :  { %v1305_v37 = vpop.f32.mrb[23].mxu1  ;;  %1311 = vmatmul.mubr.msk.bf16.vlgmr.msra.gmra.mrb[24].mxu0 %vm134_vm1, %v848_v34 }
 0xa77   :  { %1326 = vmatprep.mubr.msk.bf16.mxu0 %vm1540_vm0, %v1539_v0  ;;  %1323 = vmatpush3.bf16.msra.mxu0 %v1356_v14 }
 0xa78   :  { %1324 = vmatprep.subr.bf16.mxu0 %v1539_v0 }
 0xa7b   :  { %1325 = vmatpush3.bf16.msra.mxu0 %v1357_v15 }
 0xb49   :  { %v902_v38 = vpop.f32.mrb[24].mxu0 }
 0xb4a   :  { %v903_v41 = vadd.f32 %v902_v38, %v1759_v39  ;;  %v1312_v42 = vpop.f32.mrb[25].mxu0 }
 0xb4b   :  { %v905_v43 = vpop.f32.mrb[26].mxu0 }
 0xb4c   :  { %v906_v44 = vadd.f32 %v905_v43, %v1761_v40  ;;  %v1313_v45 = vpop.f32.mrb[27].mxu0  ;;  %v909_v46 = vsel %vm134_vm1, %v903_v41, 0.0 }
 0xb4d   :  { %910 = vadd.xlane.f32.xlu1 %v909_v46 }
 0xb4e   :  { %v912_v47 = vsel %vm134_vm1, %v906_v44, 0.0 }
 0xb4f   :  { %913 = vadd.xlane.f32.xlu0 %v912_v47 }
 0xbda   :  { %v911_v48 = vpop.xlane.xlu1 %910 }
 0xbdb   :  { %v915_v49 = vmul.f32 0.03125, %v911_v48 }
 0xbdc   :  { %v914_v50 = vpop.xlane.xlu0 %913 }
 0xbdd   :  { %v917_v51 = vsub.f32 %v903_v41, %v915_v49  ;;  %v916_v52 = vmul.f32 0.03125, %v914_v50 }
 0xbdf   :  { %v918_v53 = vsub.f32 %v906_v44, %v916_v52  ;;  %v919_v54 = vmul.f32 %v917_v51, %v917_v51 }
 0xbe1   :  { %v921_v39 = vsel %vm134_vm1, %v919_v54, 0.0  ;;  %v920_v55 = vmul.f32 %v918_v53, %v918_v53 }
 0xbe2   :  { %922 = vadd.xlane.f32.xlu0 %v921_v39 }
 0xbe3   :  { %v924_v40 = vsel %vm134_vm1, %v920_v55, 0.0 }
 0xbe4   :  { %925 = vadd.xlane.f32.xlu1 %v924_v40 }
 0xc6f   :  { %v923_v58 = vpop.xlane.xlu0 %922 }
 0xc70   :  { %v927_v59 = vmul.f32 0.03125, %v923_v58 }
 0xc71   :  { %v926_v60 = vpop.xlane.xlu1 %925 }
 0xc72   :  { %v929_v61 = vadd.f32 1e-05, %v927_v59  ;;  %v928_v62 = vmul.f32 0.03125, %v926_v60  ;;  %v1187_v59 = vld [vmem:[%s1863_s9 + $0x6] ss:$0 sm:$0xff] }
 0xc74   :  { %1378 = vrsqrt.f32 %v929_v61  ;;  %v930_v63 = vadd.f32 1e-05, %v928_v62  ;;  %v1188_v62 = vld [vmem:[%s1863_s9 + $0x7] ss:$0 sm:$0xff] }
 0xc76   :  { %1380 = vrsqrt.f32 %v930_v63 }
 0xc7e   :  { %v1379_v1 = vpop.eup %1378 }
 0xc7f   :  { %v933_v5 = vmul.f32 %v1379_v1, %v917_v51 }
 0xc80   :  { %v1381_v6 = vpop.eup %1380 }
 0xc81   :  { %v939_v7 = vmul.f32 %v1175_v2, %v933_v5  ;;  %v934_v8 = vmul.f32 %v1381_v6, %v918_v53 }
 0xc83   :  { %v940_v10 = vmul.f32 %v1175_v2, %v934_v8  ;;  %v945_v11 = vadd.f32 %v1176_v9, %v939_v7 }
 0xc85   :  { %v946_v12 = vadd.f32 %v1176_v9, %v940_v10 }
 0xc87   :  { %v947_v13 = vpack.c.bf16 %v946_v12, %v945_v11 }
 0xc89   :  { %1319 = vmatmul.mubr.msk.bf16.vlgmr.msra.gmra.mrb[24].mxu1 %vm134_vm1, %v947_v13 }
 0xd5c   :  { %v1005_v3 = vpop.f32.mrb[24].mxu1 }
 0xd5d   :  { %v1006_v17 = vadd.f32 %v1177_v16, %v1005_v3  ;;  %v1320_v4 = vpop.f32.mrb[25].mxu1 }
 0xd5e   :  { %v1008_v18 = vpop.f32.mrb[26].mxu1 }
 0xd5f   :  { %v1014_v19 = vmin.f32 %v1006_v17, 0.0  ;;  %v1009_v20 = vadd.f32 %v1177_v16, %v1008_v18  ;;  %v1321_v21 = vpop.f32.mrb[27].mxu1  ;;  %vm1012_vm5 = vcmp.gt.f32.partialorder %v1006_v17, 0.0 }
 0xd61   :  { %v1016_v22 = vmul.f32 1.442695, %v1014_v19  ;;  %v1015_v23 = vmin.f32 %v1009_v20, 0.0  ;;  %vm1013_vm6 = vcmp.gt.f32.partialorder %v1009_v20, 0.0 }
 0xd63   :  { %1382 = vpow2.f32 %v1016_v22  ;;  %v1018_v24 = vmul.f32 1.442695, %v1015_v23 }
 0xd65   :  { %1384 = vpow2.f32 %v1018_v24 }
 0xd6d   :  { %v1383_v25 = vpop.eup %1382 }
 0xd6e   :  { %v1181_v0 = vadd.f32 -1.0, %v1383_v25 }
 0xd6f   :  { %v1385_v26 = vpop.eup %1384 }
 0xd70   :  { %v1182_v27 = vadd.f32 -1.0, %v1385_v26  ;;  %v1022_v28 = vsel %vm1012_vm5, %v1006_v17, %v1181_v0 }
 0xd72   :  { %v1023_v29 = vsel %vm1013_vm6, %v1009_v20, %v1182_v27 }
 0xd73   :  { %v1024_v30 = vpack.c.bf16 %v1023_v29, %v1022_v28 }
 0xd75   :  { %1327 = vmatmul.mubr.msk.bf16.vlgmr.msra.gmra.mrb[28].mxu0 %vm134_vm1, %v1024_v30 }
 0xe48   :  { %v1082_v32 = vpop.f32.mrb[28].mxu0 }
 0xe49   :  { %v1083_v33 = vadd.f32 %v1183_v31, %v1082_v32  ;;  %v1328_v34 = vpop.f32.mrb[29].mxu0 }
 0xe4a   :  { %v1085_v35 = vpop.f32.mrb[30].mxu0 }
 0xe4b   :  { %v1086_v36 = vadd.f32 %v1183_v31, %v1085_v35  ;;  %v1329_v37 = vpop.f32.mrb[31].mxu0  ;;  %v1089_v38 = vadd.f32 %v1083_v33, %v945_v11 }
 0xe4d   :  { %v1091_v41 = vsel %vm134_vm1, %v1089_v38, 0.0  ;;  %v1090_v42 = vadd.f32 %v1086_v36, %v946_v12 }
 0xe4e   :  { %1092 = vadd.xlane.f32.xlu0 %v1091_v41 }
 0xe4f   :  { %v1094_v43 = vsel %vm134_vm1, %v1090_v42, 0.0 }
 0xe50   :  { %1095 = vadd.xlane.f32.xlu1 %v1094_v43 }
 0xedb   :  { %v1093_v44 = vpop.xlane.xlu0 %1092 }
 0xedc   :  { %v1097_v45 = vmul.f32 0.03125, %v1093_v44 }
 0xedd   :  { %v1096_v46 = vpop.xlane.xlu1 %1095 }
 0xede   :  { %v1099_v47 = vsub.f32 %v1089_v38, %v1097_v45  ;;  %v1098_v48 = vmul.f32 0.03125, %v1096_v46 }
 0xee0   :  { %v1100_v49 = vsub.f32 %v1090_v42, %v1098_v48  ;;  %v1101_v50 = vmul.f32 %v1099_v47, %v1099_v47 }
 0xee2   :  { %v1103_v51 = vsel %vm134_vm1, %v1101_v50, 0.0  ;;  %v1102_v52 = vmul.f32 %v1100_v49, %v1100_v49 }
 0xee3   :  { %1104 = vadd.xlane.f32.xlu0 %v1103_v51 }
 0xee4   :  { %v1106_v53 = vsel %vm134_vm1, %v1102_v52, 0.0 }
 0xee5   :  { %1107 = vadd.xlane.f32.xlu1 %v1106_v53 }
 0xf70   :  { %v1105_v54 = vpop.xlane.xlu0 %1104 }
 0xf71   :  { %v1109_v39 = vmul.f32 0.03125, %v1105_v54 }
 0xf72   :  { %v1108_v55 = vpop.xlane.xlu1 %1107 }
 0xf73   :  { %v1111_v40 = vadd.f32 1e-05, %v1109_v39  ;;  %v1110_v56 = vmul.f32 0.03125, %v1108_v55 }
 0xf75   :  { %1386 = vrsqrt.f32 %v1111_v40  ;;  %v1112_v57 = vadd.f32 1e-05, %v1110_v56 }
 0xf77   :  { %1388 = vrsqrt.f32 %v1112_v57 }
 0xf7f   :  { %v1387_v58 = vpop.eup %1386 }
 0xf80   :  { %v1115_v60 = vmul.f32 %v1387_v58, %v1099_v47 }
 0xf81   :  { %v1389_v61 = vpop.eup %1388 }
 0xf82   :  { %v1116_v63 = vmul.f32 %v1389_v61, %v1100_v49  ;;  %v1121_v1 = vmul.f32 %v1187_v59, %v1115_v60 }
 0xf84   :  { %v1122_v2 = vmul.f32 %v1187_v59, %v1116_v63  ;;  %v1127_v5 = vadd.f32 %v1188_v62, %v1121_v1 }
 0xf86   :  { %v1128_v6 = vadd.f32 %v1188_v62, %v1122_v2  ;;  %1129 = vst.msk [vmem:[#allocation11] sm:$0xff] %vm134_vm1, %v1127_v5 }
 0xf88   :  { %1130 = vst.msk [vmem:[#allocation11 + $0x8] sm:$0xff] %vm134_vm1, %v1128_v6 }
 0xf89   :  { %1511 = shalt.err (!%p1508_p2)
}
 0xf8a   :  { %s1512_s25 = scalar_lea.hbm %s1864_s10, 256 }
 0xf8b   :  { %p1513_p3 = scmp.ne.s32.totalorder %s1864_s10, %s1512_s25  ;;  %p1516_p4 = scmp.lt.u32.totalorder %s1512_s25, %s1864_s10 }
 0xf8d   :  { %p1518_p5 = pnand %p1516_p4, %p1513_p3 }
 0xf8f   :  { %1521 = shalt.err (!%p1518_p5)
}
 0xf90   :  { %1142 = dma.vmem_to_hbm [thread:$0]  %s1137_s21, 256, %s1864_s10, [#allocation4], %s1535_s6, %s1535_s6, %s1536_s28  }
 0xf91   :  { %1528 = dma.done.wait [#allocation4], 256  }
 0xf92   :  { %1529 = vsyncadd [#allocation4], 4294967040 }
 0xf93   :  { %1146 = vsyncpa [#allocation3], 1 }
 0xf94   :  { %1147 = vsyncpa [#allocation6], 1 }
 0xf95   :  { %1148 = vsyncpa [#allocation9], 1 }
 0xf96   :  { %1149 = vsyncpa [#allocation4], 1 }

</bundles_post_ra>
